<compile_context>
chip_gen: v6e
topology: v6e:2x2x1
jax: 0.10.0
libtpu: 0.0.40
codegen_flags: <defaults>
</compile_context>

<pallas_src>
import jax
import jax.numpy as jnp
from jax.experimental import pallas as pl
from jax.experimental.pallas import tpu as pltpu


def _round_up(a, m):
    return (a + m - 1) // m * m


def conv1d_matmul_kernel(w_ref, slab_ref, b_ref, o_ref):
    # w_ref:    (COUT_TILE, K*Cin_pad)   im2col weight (compute dtype)
    # slab_ref: (K*Cin_pad, LANE_TILE)   im2col input slab (compute dtype)
    # b_ref:    (COUT_TILE, 1)           bias (f32)
    # o_ref:    (COUT_TILE, LANE_TILE)   output tile
    acc = jnp.dot(w_ref[...], slab_ref[...], preferred_element_type=jnp.float32)
    o_ref[...] = (acc + b_ref[...]).astype(o_ref.dtype)


def lrp_conv1d_forward(x, weight, bias, *, use_bf16=True, out_dtype=None,
                       cout_tile=None, lane_tile=None):
    """Conv1d forward (stride=1, padding=0, dilation=1) via Pallas.

    x:      (N, Cin, L)       float32 (NCL, PyTorch layout)
    weight: (Cout, Cin, K)    float32 (PyTorch layout)
    bias:   (Cout,)           float32
    returns (N, Cout, L - K + 1)
    """
    N, Cin, L = x.shape
    Cout, Cin_w, K = weight.shape
    assert Cin == Cin_w
    Lout = L - K + 1
    assert Lout >= 1
    out_dtype = x.dtype if out_dtype is None else out_dtype

    compute_dtype = jnp.bfloat16 if use_bf16 else jnp.float32
    comp_bytes = jnp.dtype(compute_dtype).itemsize
    out_bytes = jnp.dtype(out_dtype).itemsize

    # ---- padded / tiled geometry --------------------------------------------
    # bf16 packs 2 rows per sublane -> round Cin to 16 to avoid packing shuffles.
    cin_pad = _round_up(Cin, 16 if use_bf16 else 8)
    kcin = K * cin_pad

    cout_r8 = _round_up(Cout, 8)
    if cout_tile is None:
        # 256 matches v6e/v7x native MXU dims when Cout is large; a single
        # small tile otherwise.  (v5e handles 256 as two 128 passes.)
        cout_tile = cout_r8 if cout_r8 <= 256 else 256
    cout_pad = _round_up(cout_r8, cout_tile)
    n_ct = cout_pad // cout_tile

    lanes = N * Lout
    if lane_tile is None:
        # Bound the per-buffer working set (slab column + output column) to
        # ~7 MiB so 2-deep double buffering stays well inside v7x's 64 MiB
        # VMEM and under the 32 MiB scoped limit set below.
        budget = 7 * 1024 * 1024
        per_lane = kcin * comp_bytes + cout_tile * out_bytes
        lane_tile = max(128, min(4096,
                                 (budget // per_lane) // 128 * 128,
                                 _round_up(lanes, 128)))
    lanes_pad = _round_up(lanes, lane_tile)
    n_lt = lanes_pad // lane_tile

    # ---- wrapper-side im2col (lane-dense, streamed by BlockSpec) ------------
    x_p = jnp.pad(x, ((0, 0), (0, cin_pad - Cin), (0, 0)))       # (N, Cin_pad, L)
    # taps: (N, K, Cin_pad, Lout), tap k = x_p[:, :, k:k+Lout]
    taps = jnp.stack([x_p[:, :, k:k + Lout] for k in range(K)], axis=1)
    # -> (K, Cin_pad, N, Lout) -> (K*Cin_pad, N*Lout): row = k*Cin_pad + c,
    # column = n*Lout + l   (batch folded into matmul lanes)
    slab = jnp.transpose(taps, (1, 2, 0, 3)).reshape(kcin, lanes)
    slab = jnp.pad(slab, ((0, 0), (0, lanes_pad - lanes))).astype(compute_dtype)

    # weight (Cout, Cin, K) -> (Cout_pad, K*Cin_pad), column = k*Cin_pad + c
    w_t = jnp.transpose(weight, (0, 2, 1))                        # (Cout, K, Cin)
    w_t = jnp.pad(w_t, ((0, cout_pad - Cout), (0, 0), (0, cin_pad - Cin)))
    w_2d = w_t.reshape(cout_pad, kcin).astype(compute_dtype)

    b_2d = jnp.pad(bias, (0, cout_pad - Cout)).reshape(cout_pad, 1)
    b_2d = b_2d.astype(jnp.float32)

    # ---- grid ordering: keep the larger operand resident across inner loop --
    weight_bytes = w_2d.size * comp_bytes
    slab_bytes = slab.size * comp_bytes
    out_total_bytes = cout_pad * lanes_pad * out_bytes

    if weight_bytes <= slab_bytes:
        # slab block constant across the inner cout loop (DMA'd once per lane
        # tile); the small weight is re-fetched per step.
        grid = (n_lt, n_ct)
        w_map = lambda lt, co: (co, 0)
        s_map = lambda lt, co: (0, lt)
        b_map = lambda lt, co: (co, 0)
        o_map = lambda lt, co: (co, lt)
        hbm_bytes = slab_bytes + n_lt * weight_bytes + out_total_bytes
    else:
        grid = (n_ct, n_lt)
        w_map = lambda co, lt: (co, 0)
        s_map = lambda co, lt: (0, lt)
        b_map = lambda co, lt: (co, 0)
        o_map = lambda co, lt: (co, lt)
        hbm_bytes = weight_bytes + n_ct * slab_bytes + out_total_bytes

    cost = pl.CostEstimate(
        flops=2 * cout_pad * kcin * lanes_pad,
        transcendentals=0,
        bytes_accessed=hbm_bytes,
    )

    out_2d = pl.pallas_call(
        conv1d_matmul_kernel,
        out_shape=jax.ShapeDtypeStruct((cout_pad, lanes_pad), out_dtype),
        grid_spec=pltpu.PrefetchScalarGridSpec(
            num_scalar_prefetch=0,
            grid=grid,
            in_specs=[
                pl.BlockSpec((cout_tile, kcin), w_map),
                pl.BlockSpec((kcin, lane_tile), s_map),
                pl.BlockSpec((cout_tile, 1), b_map),
            ],
            out_specs=pl.BlockSpec((cout_tile, lane_tile), o_map),
        ),
        compiler_params=pltpu.CompilerParams(
            # both axes independent -> megacore can shard either
            dimension_semantics=("parallel", "parallel"),
            # fits the default-safe scoped budget on v5e/v6e and v7x's 64 MiB
            vmem_limit_bytes=32 * 1024 * 1024,
        ),
        cost_estimate=cost,
    )(w_2d, slab, b_2d)

    # (Cout_pad, lanes_pad) -> (N, Cout, Lout): column index was n*Lout + l.
    y = out_2d[:Cout, :lanes].reshape(Cout, N, Lout)
    return jnp.transpose(y, (1, 0, 2))


if __name__ == "__main__":
    # Small shapes consistent with a Conv1d module:
    # batch=2, in_channels=4, out_channels=8, length=16, kernel_size=3.
    N, Cin, Cout, L, K = 2, 4, 8, 16, 3

    key = jax.random.PRNGKey(0)
    kx, kw, kb = jax.random.split(key, 3)
    x = jax.random.normal(kx, (N, Cin, L), dtype=jnp.float32)
    weight = jax.random.normal(kw, (Cout, Cin, K), dtype=jnp.float32) * 0.1
    bias = jax.random.normal(kb, (Cout,), dtype=jnp.float32) * 0.1

    # Reference (plain JAX conv, NCL layout).
    y_ref = jax.lax.conv_general_dilated(
        x, weight, window_strides=(1,), padding="VALID",
        dimension_numbers=("NCH", "OIH", "NCH")) + bias.reshape(1, Cout, 1)

    # Exact f32-MXU path.
    y = jax.block_until_ready(lrp_conv1d_forward(x, weight, bias, use_bf16=False))
    assert y.shape == (N, Cout, L - K + 1)
    assert jnp.allclose(y, y_ref, rtol=1e-3, atol=1e-3)

    # Fast bf16-MXU path (f32 accumulation) — looser tolerance.
    y_bf = jax.block_until_ready(lrp_conv1d_forward(x, weight, bias, use_bf16=True))
    assert y_bf.shape == (N, Cout, L - K + 1)
    assert jnp.allclose(y_bf, y_ref, rtol=3e-2, atol=3e-2)

    # TODO(synk): the LRP relevance-propagation rules live in autograd_fn's
    # custom backward and are not part of this forward-pass kernel.
    print("KERNEL_OK")
</pallas_src>

<mosaic_0001>
module attributes {stable_mosaic.version = 11 : i64} {
  func.func @conv1d_matmul_kernel(%arg0: i32, %arg1: i32, %arg2: memref<8x24xf32, #tpu.memory_space<vmem>>, %arg3: memref<24x128xf32, #tpu.memory_space<vmem>>, %arg4: memref<8x1xf32, #tpu.memory_space<vmem>>, %arg5: memref<8x128xf32, #tpu.memory_space<vmem>>) attributes {dimension_semantics = [#tpu.dimension_semantics<parallel>, #tpu.dimension_semantics<parallel>], iteration_bounds = array<i64: 1, 1>, scalar_prefetch = 0 : i64, scratch_operands = 0 : i64, tpu.core_type = #tpu.core_type<tc>, window_params = [{transform_indices = @transform_0, window_bounds = array<i64: 8, 24>}, {transform_indices = @transform_1, window_bounds = array<i64: 24, 128>}, {transform_indices = @transform_2, window_bounds = array<i64: 8, 1>}, {transform_indices = @transform_3, window_bounds = array<i64: 8, 128>}]} {
    %c0 = arith.constant 0 : index
    %c0_0 = arith.constant 0 : index
    %0 = vector.load %arg2[%c0, %c0_0] : memref<8x24xf32, #tpu.memory_space<vmem>>, vector<8x24xf32>
    %c0_1 = arith.constant 0 : index
    %c0_2 = arith.constant 0 : index
    %1 = vector.load %arg3[%c0_1, %c0_2] : memref<24x128xf32, #tpu.memory_space<vmem>>, vector<24x128xf32>
    %cst = arith.constant dense<0.000000e+00> : vector<8x128xf32>
    %2 = tpu.matmul %0, %1, %cst {dimension_numbers = #tpu.dot_dimension_numbers<[1], [0], [0], [1], [0, 0, 1, 1], [], []>} : vector<8x24xf32>, vector<24x128xf32>, vector<8x128xf32> -> vector<8x128xf32>
    %c0_3 = arith.constant 0 : index
    %c0_4 = arith.constant 0 : index
    %3 = vector.load %arg4[%c0_3, %c0_4] : memref<8x1xf32, #tpu.memory_space<vmem>>, vector<8x1xf32>
    %4 = vector.broadcast %3 : vector<8x1xf32> to vector<8x128xf32>
    %5 = arith.addf %2, %4 : vector<8x128xf32>
    %c0_5 = arith.constant 0 : index
    %c0_6 = arith.constant 0 : index
    %6 = vector.load %arg5[%c0_5, %c0_6] : memref<8x128xf32, #tpu.memory_space<vmem>>, vector<8x128xf32>
    tpu.vector_store %arg5[%c0_5, %c0_6], %5 {strides = array<i32>} : memref<8x128xf32, #tpu.memory_space<vmem>>, vector<8x128xf32>,
    return
  }
  func.func @transform_0(%arg0: i32, %arg1: i32) -> (i32, i32) {
    %c0_i32 = arith.constant 0 : i32
    %c0_i32_0 = arith.constant 0 : i32
    return %arg1, %c0_i32 : i32, i32
  }
  func.func @transform_1(%arg0: i32, %arg1: i32) -> (i32, i32) {
    %c0_i32 = arith.constant 0 : i32
    %c0_i32_0 = arith.constant 0 : i32
    return %c0_i32, %arg0 : i32, i32
  }
  func.func @transform_2(%arg0: i32, %arg1: i32) -> (i32, i32) {
    %c0_i32 = arith.constant 0 : i32
    %c0_i32_0 = arith.constant 0 : i32
    return %arg1, %c0_i32 : i32, i32
  }
  func.func @transform_3(%arg0: i32, %arg1: i32) -> (i32, i32) {
    %c0_i32 = arith.constant 0 : i32
    return %arg1, %arg0 : i32, i32
  }
}

</mosaic_0001>

<bundles_post_ra>
// kernel: tpu_custom_call.1
= control target key start
LH: loop header
LB: loop body
LE: loop exit
PB: predicated region body
PF: predicated region fallthrough
CT: control target
= control target key end

     0   :  { %8 = vsyncpa [#allocation3], 0  ;;  %s234_s0 = inlined_call_operand.vmem [shape: f32[8,24], index: 0, kind: input, shape index: {}]   ;;  %s235_s1 = inlined_call_operand.hbm [shape: f32[24,128], index: 1, kind: input, shape index: {}]   ;;  %s236_s2 = inlined_call_operand.vmem [shape: f32[8,1], index: 2, kind: input, shape index: {}]   ;;  %s237_s3 = inlined_call_operand.hbm [shape: f32[8,128], index: 3, kind: output, shape index: {}]  }
   0x1   :  { %9 = vsyncpa [#allocation4], 0  ;;  %s195_s12 = smov [#allocation2]  }
   0x2   :  { %s17_s13 = sshll.u32 %s195_s12, 4  ;;  %s18_s13 = int_to_ptr.vmem [resolvable:$true] %s17_s13 }
   0x3   :  { %s159_s14 = scalar_lea.vmem %s18_s13, 384  ;;  %p164_p1 = scmp.lt.s32.totalorder %s18_s13, %s18_s13 }
   0x4   :  { %p160_p0 = scmp.ne.s32.totalorder %s18_s13, %s159_s14  ;;  %p165_p2 = scmp.lt.s32.totalorder %s159_s14, %s159_s14 }
   0x6   :  { %p166_p3 = por %p165_p2, %p164_p1 }
   0x8   :  { %p167_p4 = pnand %p166_p3, %p160_p0 }
   0xa   :  { %170 = shalt.err (!%p167_p4)
}
   0xb   :  { %s196_s15 = smov 128   ;;  %s197_s16 = smov 8  }
   0xc   :  { %23 = dma.hbm_to_vmem [thread:$0]  %s235_s1, 384, %s18_s13, [#allocation3], %s196_s15, %s196_s15, %s197_s16  }
   0xd   :  { %191 = dma.done.wait [#allocation3], 384  }
   0xe   :  { %192 = vsyncadd [#allocation3], 4294966912  ;;  %v198_v0 = vmov 0.0   ;;  %vm199_vm0 = vmmov 0   ;;  %v200_v1 = vmov 0   ;;  %v32_v2 = vld [vmem:[#allocation2 + $0x10] sm:$0xff] }
   0xf   :  { %134 = vmatprep.subr.mxu0 %v198_v0  ;;  %140 = vmatprep.mubr.msk.f32.mxu0 %vm199_vm0, %v198_v0  ;;  %v31_v3 = vld [vmem:[#allocation2 + $0x8] sm:$0xff]  ;;  %v33_v4 = vld [vmem:[%s236_s2] sm:$0xff]  ;;  %vm39_vm1 = vcmask 195584   ;;  %s201_s22 = smov [#allocation5]  }
  0x10   :  { %150 = vset.pattern.permute.xlu0 %v200_v1  ;;  %135 = vmatpush3.msra.mxu0 %v32_v2  ;;  %v30_v5 = vld [vmem:[#allocation2] sm:$0xff]  ;;  %s120_s23 = sshll.u32 %s201_s22, 4  ;;  %s121_s23 = int_to_ptr.vmem [resolvable:$true] %s120_s23 }
  0x11   :  { %136 = vmatprep.subr.mxu0 %v198_v0  ;;  %36 = vperm.xlu0 %150, %v33_v4   ;;  %v29_v6 = vld [vmem:[%s234_s0] sm:$0xff]  ;;  %s171_s2 = scalar_lea.vmem %s121_s23, 128  ;;  %p176_p6 = scmp.lt.s32.totalorder %s121_s23, %s121_s23 }
  0x12   :  { %137 = vmatpush3.msra.mxu0 %v31_v3  ;;  %p172_p5 = scmp.ne.s32.totalorder %s121_s23, %s171_s2  ;;  %p177_p7 = scmp.lt.s32.totalorder %s171_s2, %s171_s2 }
  0x13   :  { %138 = vmatprep.subr.mxu0 %v198_v0 }
  0x14   :  { %139 = vmatpush3.msra.mxu0 %v30_v5  ;;  %p178_p8 = por %p177_p7, %p176_p6 }
  0x15   :  { %141 = vmatmul.mubr.msk.f32.vlgmr.msra.gmra.mxu0 %vm39_vm1, %v29_v6 }
  0x16   :  { %p179_p9 = pnand %p178_p8, %p172_p5 }
  0x8c   :  { %v37_v7 = vpop.permute.xlu0 %36 }
  0xd5   :  { %v109_v8 = vpop.f32.mrf.mxu0 }
  0xd6   :  { %v110_v9 = vadd.f32 %v109_v8, %v37_v7 }
  0xd7   :  { %v142_v10 = vpop.f32.mrf.mxu0 }
  0xd8   :  { %113 = vst [vmem:[#allocation5] sm:$0xff] %v110_v9 }
  0xd9   :  { %182 = shalt.err (!%p179_p9)
}
  0xda   :  { %123 = dma.vmem_to_hbm [thread:$0]  %s121_s23, 128, %s237_s3, [#allocation4]  }
  0xdb   :  { %193 = dma.done.wait [#allocation4], 128  }
  0xdc   :  { %194 = vsyncadd [#allocation4], 4294967168 }
  0xdd   :  { %127 = vsyncpa [#allocation3], 1 }
  0xde   :  { %128 = vsyncpa [#allocation4], 1 }

</bundles_post_ra>
